<compile_context>
chip_gen: v7x
topology: tpu7x:2x2x1
jax: 0.10.0
libtpu: 0.0.40
codegen_flags: <defaults>
</compile_context>

<pallas_src>
import functools

import jax
import jax.numpy as jnp
from jax import lax
from jax.experimental import pallas as pl
from jax.experimental.pallas import tpu as pltpu

EPS = 1e-5


# ----------------------------------------------------------------------------
# The fused kernel: whole Conv_TDF forward in one grid step.
# ----------------------------------------------------------------------------
def _fused_kernel(n_conv, x_ref, sprev_ref, snext_ref, *refs):
    """Layout: activations are a 2-D slab, rows = N*T (sublanes),
    lanes = C*F (channel-major), i.e. a[n*T + t, c*F + f] = x[n, c, t, f].

    refs = [w_conv_0, shift_conv_0, ..., w_conv_{L-1}, shift_conv_{L-1},
            w_tdf1, shift_tdf1, w_tdf2, shift_tdf2, out_ref]
    """
    o_ref = refs[-1]
    a = x_ref[...]                         # (NT, C*F) f32
    sp = sprev_ref[...]                    # (NT, NT): row r <- row r-1, 0 at t==0
    sn = snext_ref[...]                    # (NT, NT): row r <- row r+1, 0 at t==T-1

    # --- L x (3x3 conv + folded BN + ReLU), each as ONE K=3*C*F matmul ------
    for l in range(n_conv):
        w = refs[2 * l][...]               # (3*C*F, C*F)  banded weight (BN scale folded)
        sh = refs[2 * l + 1][...]          # (1, C*F)      conv bias + BN shift folded
        prev = jnp.dot(sp, a, preferred_element_type=jnp.float32)
        nxt = jnp.dot(sn, a, preferred_element_type=jnp.float32)
        xb = jnp.concatenate([prev, a, nxt], axis=1)          # (NT, 3*C*F)
        a = jnp.maximum(
            jnp.dot(xb, w, preferred_element_type=jnp.float32) + sh, 0.0)

    # --- TDF bottleneck (block-diagonal linears, BN folded) + residual ------
    w1 = refs[2 * n_conv][...]             # (C*F,  C*Fh)
    c1 = refs[2 * n_conv + 1][...]         # (1,    C*Fh)
    w2 = refs[2 * n_conv + 2][...]         # (C*Fh, C*F)
    c2 = refs[2 * n_conv + 3][...]         # (1,    C*F)
    h = jnp.maximum(jnp.dot(a, w1, preferred_element_type=jnp.float32) + c1, 0.0)
    y = jnp.maximum(jnp.dot(h, w2, preferred_element_type=jnp.float32) + c2, 0.0)
    o_ref[...] = (a + y).astype(o_ref.dtype)


# ----------------------------------------------------------------------------
# One-time parameter folding / layout prep (wrapper side, plain JAX).
# ----------------------------------------------------------------------------
def _bn_fold(gamma, beta, mean, var):
    scale = gamma / jnp.sqrt(var + EPS)
    shift = beta - mean * scale
    return scale, shift


def prepare_fused_params(params, N, C, T, F):
    """Fold BN/bias into the weights and pre-bake the conv as banded matmuls."""
    NT, CF = N * T, C * F

    # Temporal neighbour selection matrices (zero padding at image edges).
    r = jnp.arange(NT)
    t = r % T
    sprev = ((r[None, :] == r[:, None] - 1) & (t[:, None] != 0)).astype(jnp.float32)
    snext = ((r[None, :] == r[:, None] + 1) & (t[:, None] != T - 1)).astype(jnp.float32)

    # Frequency-axis band structure: column f_out uses tap kw = f_in - f_out + 1.
    fi = jnp.arange(F)[:, None]
    fo = jnp.arange(F)[None, :]
    kw = fi - fo + 1
    valid = ((kw >= 0) & (kw <= 2)).astype(jnp.float32)
    kwc = jnp.clip(kw, 0, 2)

    conv_ops = []
    for layer in params["convs"]:
        scale, shift = _bn_fold(layer["gamma"], layer["beta"],
                                layer["mean"], layer["var"])
        w = layer["w_oihw"]                               # (Co, Ci, 3, 3)
        band = w[:, :, :, kwc] * valid                    # (Co, Ci, 3, F, F)
        # rows = (kh, ci, f_in), cols = (co, f_out)
        wbig = jnp.transpose(band, (2, 1, 3, 0, 4)).reshape(3 * CF, CF)
        scale_cols = jnp.repeat(scale, F).reshape(1, CF)
        shift_cols = jnp.repeat(layer["bias"] * scale + shift, F).reshape(1, CF)
        conv_ops.append((wbig * scale_cols, shift_cols))  # fold BN scale into W

    tdf = params["tdf"]
    Fh = tdf["w1"].shape[0]
    s1, t1 = _bn_fold(tdf["gamma1"], tdf["beta1"], tdf["mean1"], tdf["var1"])
    s2, t2 = _bn_fold(tdf["gamma2"], tdf["beta2"], tdf["mean2"], tdf["var2"])
    eye_c = jnp.eye(C, dtype=jnp.float32)
    s1_cols = jnp.repeat(s1, Fh).reshape(1, C * Fh)
    s2_cols = jnp.repeat(s2, F).reshape(1, CF)
    w1f = jnp.kron(eye_c, tdf["w1"].T) * s1_cols          # (C*F,  C*Fh)
    w2f = jnp.kron(eye_c, tdf["w2"].T) * s2_cols          # (C*Fh, C*F)
    c1 = (jnp.tile(tdf["b1"], C).reshape(1, C * Fh) * s1_cols
          + jnp.repeat(t1, Fh).reshape(1, C * Fh))
    c2 = (jnp.tile(tdf["b2"], C).reshape(1, CF) * s2_cols
          + jnp.repeat(t2, F).reshape(1, CF))

    return dict(sprev=sprev, snext=snext, conv_ops=conv_ops,
                tdf_ops=(w1f, c1, w2f, c2))


# ----------------------------------------------------------------------------
# Forward wrapper: one pallas_call for the whole module.
# ----------------------------------------------------------------------------
def conv_tdf_forward(x_nchw, fused):
    N, C, T, F = x_nchw.shape
    NT, CF = N * T, C * F

    # NCHW -> lane-dense 2-D slab (rows = N*T, lanes = C*F).
    x2d = jnp.transpose(x_nchw, (0, 2, 1, 3)).reshape(NT, CF)

    operands = [x2d, fused["sprev"], fused["snext"]]
    for wbig, shift in fused["conv_ops"]:
        operands += [wbig, shift]
    operands += list(fused["tdf_ops"])

    def full(shape):
        return pl.BlockSpec(shape, lambda i: (0,) * len(shape))

    out2d = pl.pallas_call(
        functools.partial(_fused_kernel, len(fused["conv_ops"])),
        out_shape=jax.ShapeDtypeStruct((NT, CF), jnp.float32),
        grid=(1,),                                   # whole net fits in VMEM
        in_specs=[full(op.shape) for op in operands],
        out_specs=full((NT, CF)),
        compiler_params=pltpu.CompilerParams(
            dimension_semantics=("arbitrary",)),
    )(*operands)

    # Slab back to NCHW (pure wrapper layout plumbing).
    return out2d.reshape(N, T, C, F).transpose(0, 2, 1, 3)


# ----------------------------------------------------------------------------
# Pure-JAX reference (no Pallas) for verification.
# ----------------------------------------------------------------------------
def reference_forward(x_nchw, params):
    x = x_nchw
    for layer in params["convs"]:
        y = lax.conv_general_dilated(
            x, layer["w_oihw"], window_strides=(1, 1), padding="SAME",
            dimension_numbers=("NCHW", "OIHW", "NCHW"))
        y = y + layer["bias"].reshape(1, -1, 1, 1)
        y = (layer["gamma"].reshape(1, -1, 1, 1)
             * (y - layer["mean"].reshape(1, -1, 1, 1))
             / jnp.sqrt(layer["var"].reshape(1, -1, 1, 1) + EPS)
             + layer["beta"].reshape(1, -1, 1, 1))
        x = jnp.maximum(y, 0.0)

    tdf = params["tdf"]
    z = jnp.einsum("nctf,gf->nctg", x, tdf["w1"]) + tdf["b1"]
    z = (tdf["gamma1"].reshape(1, -1, 1, 1)
         * (z - tdf["mean1"].reshape(1, -1, 1, 1))
         / jnp.sqrt(tdf["var1"].reshape(1, -1, 1, 1) + EPS)
         + tdf["beta1"].reshape(1, -1, 1, 1))
    z = jnp.maximum(z, 0.0)
    z = jnp.einsum("nctg,fg->nctf", z, tdf["w2"]) + tdf["b2"]
    z = (tdf["gamma2"].reshape(1, -1, 1, 1)
         * (z - tdf["mean2"].reshape(1, -1, 1, 1))
         / jnp.sqrt(tdf["var2"].reshape(1, -1, 1, 1) + EPS)
         + tdf["beta2"].reshape(1, -1, 1, 1))
    z = jnp.maximum(z, 0.0)
    return x + z


# ----------------------------------------------------------------------------
# Deterministic parameter construction (distinct PRNG keys per tensor).
# ----------------------------------------------------------------------------
def make_params(key, c, l, f, bn):
    fh = f // bn
    ks = iter(jax.random.split(key, 6 * l + 12))
    nk = lambda: next(ks)
    convs = []
    for _ in range(l):
        convs.append(dict(
            w_oihw=0.2 * jax.random.normal(nk(), (c, c, 3, 3), jnp.float32),
            bias=0.1 * jax.random.normal(nk(), (c,), jnp.float32),
            gamma=1.0 + 0.1 * jax.random.normal(nk(), (c,), jnp.float32),
            beta=0.1 * jax.random.normal(nk(), (c,), jnp.float32),
            mean=0.1 * jax.random.normal(nk(), (c,), jnp.float32),
            var=0.5 + jnp.abs(jax.random.normal(nk(), (c,), jnp.float32)),
        ))
    tdf = dict(
        w1=0.2 * jax.random.normal(nk(), (fh, f), jnp.float32),     # [out, in]
        b1=0.1 * jax.random.normal(nk(), (fh,), jnp.float32),
        gamma1=1.0 + 0.1 * jax.random.normal(nk(), (c,), jnp.float32),
        beta1=0.1 * jax.random.normal(nk(), (c,), jnp.float32),
        mean1=0.1 * jax.random.normal(nk(), (c,), jnp.float32),
        var1=0.5 + jnp.abs(jax.random.normal(nk(), (c,), jnp.float32)),
        w2=0.2 * jax.random.normal(nk(), (f, fh), jnp.float32),     # [out, in]
        b2=0.1 * jax.random.normal(nk(), (f,), jnp.float32),
        gamma2=1.0 + 0.1 * jax.random.normal(nk(), (c,), jnp.float32),
        beta2=0.1 * jax.random.normal(nk(), (c,), jnp.float32),
        mean2=0.1 * jax.random.normal(nk(), (c,), jnp.float32),
        var2=0.5 + jnp.abs(jax.random.normal(nk(), (c,), jnp.float32)),
    )
    return dict(convs=convs, tdf=tdf)


if __name__ == "__main__":
    # Conv_TDF(c=4, l=2, f=16, k=3, bn=2, bias=True); input x: NCHW [2, 4, 8, 16]
    N, C, T, F = 2, 4, 8, 16
    L, BN = 2, 2

    key = jax.random.PRNGKey(0)
    kx, kp = jax.random.split(key)
    x = jax.random.normal(kx, (N, C, T, F), jnp.float32)
    params = make_params(kp, C, L, F, BN)

    fused = prepare_fused_params(params, N, C, T, F)      # one-time fold/bake
    fwd = jax.jit(conv_tdf_forward)

    out = jax.block_until_ready(fwd(x, fused))
    ref = jax.block_until_ready(reference_forward(x, params))

    assert out.shape == (N, C, T, F)
    err = float(jnp.max(jnp.abs(out - ref)))
    assert err < 1e-3, err
    print("KERNEL_OK")
</pallas_src>

<mosaic_0001>
module attributes {stable_mosaic.version = 11 : i64} {
  func.func @_fused_kernel(%arg0: i32, %arg1: memref<16x64xf32, #tpu.memory_space<vmem>>, %arg2: memref<16x16xf32, #tpu.memory_space<vmem>>, %arg3: memref<16x16xf32, #tpu.memory_space<vmem>>, %arg4: memref<192x64xf32, #tpu.memory_space<vmem>>, %arg5: memref<1x64xf32, #tpu.memory_space<vmem>>, %arg6: memref<192x64xf32, #tpu.memory_space<vmem>>, %arg7: memref<1x64xf32, #tpu.memory_space<vmem>>, %arg8: memref<64x32xf32, #tpu.memory_space<vmem>>, %arg9: memref<1x32xf32, #tpu.memory_space<vmem>>, %arg10: memref<32x64xf32, #tpu.memory_space<vmem>>, %arg11: memref<1x64xf32, #tpu.memory_space<vmem>>, %arg12: memref<16x64xf32, #tpu.memory_space<vmem>>) attributes {dimension_semantics = [#tpu.dimension_semantics<arbitrary>], iteration_bounds = array<i64: 1>, scalar_prefetch = 0 : i64, scratch_operands = 0 : i64, tpu.core_type = #tpu.core_type<tc>, window_params = [{pipeline_mode = #tpu.pipeline_mode<synchronous>, transform_indices = @transform_0, window_bounds = array<i64: 16, 64>}, {pipeline_mode = #tpu.pipeline_mode<synchronous>, transform_indices = @transform_1, window_bounds = array<i64: 16, 16>}, {pipeline_mode = #tpu.pipeline_mode<synchronous>, transform_indices = @transform_2, window_bounds = array<i64: 16, 16>}, {pipeline_mode = #tpu.pipeline_mode<synchronous>, transform_indices = @transform_3, window_bounds = array<i64: 192, 64>}, {pipeline_mode = #tpu.pipeline_mode<synchronous>, transform_indices = @transform_4, window_bounds = array<i64: 1, 64>}, {pipeline_mode = #tpu.pipeline_mode<synchronous>, transform_indices = @transform_5, window_bounds = array<i64: 192, 64>}, {pipeline_mode = #tpu.pipeline_mode<synchronous>, transform_indices = @transform_6, window_bounds = array<i64: 1, 64>}, {pipeline_mode = #tpu.pipeline_mode<synchronous>, transform_indices = @transform_7, window_bounds = array<i64: 64, 32>}, {pipeline_mode = #tpu.pipeline_mode<synchronous>, transform_indices = @transform_8, window_bounds = array<i64: 1, 32>}, {pipeline_mode = #tpu.pipeline_mode<synchronous>, transform_indices = @transform_9, window_bounds = array<i64: 32, 64>}, {pipeline_mode = #tpu.pipeline_mode<synchronous>, transform_indices = @transform_10, window_bounds = array<i64: 1, 64>}, {pipeline_mode = #tpu.pipeline_mode<synchronous>, transform_indices = @transform_11, window_bounds = array<i64: 16, 64>}]} {
    %c0 = arith.constant 0 : index
    %c0_0 = arith.constant 0 : index
    %0 = vector.load %arg1[%c0, %c0_0] : memref<16x64xf32, #tpu.memory_space<vmem>>, vector<16x64xf32>
    %c0_1 = arith.constant 0 : index
    %c0_2 = arith.constant 0 : index
    %1 = vector.load %arg2[%c0_1, %c0_2] : memref<16x16xf32, #tpu.memory_space<vmem>>, vector<16x16xf32>
    %c0_3 = arith.constant 0 : index
    %c0_4 = arith.constant 0 : index
    %2 = vector.load %arg3[%c0_3, %c0_4] : memref<16x16xf32, #tpu.memory_space<vmem>>, vector<16x16xf32>
    %c0_5 = arith.constant 0 : index
    %c0_6 = arith.constant 0 : index
    %3 = vector.load %arg4[%c0_5, %c0_6] : memref<192x64xf32, #tpu.memory_space<vmem>>, vector<192x64xf32>
    %c0_7 = arith.constant 0 : index
    %c0_8 = arith.constant 0 : index
    %4 = vector.load %arg5[%c0_7, %c0_8] : memref<1x64xf32, #tpu.memory_space<vmem>>, vector<1x64xf32>
    %cst = arith.constant dense<0.000000e+00> : vector<16x64xf32>
    %5 = tpu.matmul %1, %0, %cst {dimension_numbers = #tpu.dot_dimension_numbers<[1], [0], [0], [1], [0, 0, 1, 1], [], []>} : vector<16x16xf32>, vector<16x64xf32>, vector<16x64xf32> -> vector<16x64xf32>
    %cst_9 = arith.constant dense<0.000000e+00> : vector<16x64xf32>
    %6 = tpu.matmul %2, %0, %cst_9 {dimension_numbers = #tpu.dot_dimension_numbers<[1], [0], [0], [1], [0, 0, 1, 1], [], []>} : vector<16x16xf32>, vector<16x64xf32>, vector<16x64xf32> -> vector<16x64xf32>
    %7 = tpu.concatenate %5, %0, %6 in 1 : vector<16x64xf32>, vector<16x64xf32>, vector<16x64xf32> -> vector<16x192xf32>
    %cst_10 = arith.constant dense<0.000000e+00> : vector<16x64xf32>
    %8 = tpu.matmul %7, %3, %cst_10 {dimension_numbers = #tpu.dot_dimension_numbers<[1], [0], [0], [1], [0, 0, 1, 1], [], []>} : vector<16x192xf32>, vector<192x64xf32>, vector<16x64xf32> -> vector<16x64xf32>
    %9 = vector.broadcast %4 : vector<1x64xf32> to vector<16x64xf32>
    %10 = arith.addf %8, %9 : vector<16x64xf32>
    %cst_11 = arith.constant 0.000000e+00 : f32
    %11 = vector.broadcast %cst_11 : f32 to vector<16x64xf32>
    %12 = arith.maximumf %10, %11 : vector<16x64xf32>
    %c0_12 = arith.constant 0 : index
    %c0_13 = arith.constant 0 : index
    %13 = vector.load %arg6[%c0_12, %c0_13] : memref<192x64xf32, #tpu.memory_space<vmem>>, vector<192x64xf32>
    %c0_14 = arith.constant 0 : index
    %c0_15 = arith.constant 0 : index
    %14 = vector.load %arg7[%c0_14, %c0_15] : memref<1x64xf32, #tpu.memory_space<vmem>>, vector<1x64xf32>
    %cst_16 = arith.constant dense<0.000000e+00> : vector<16x64xf32>
    %15 = tpu.matmul %1, %12, %cst_16 {dimension_numbers = #tpu.dot_dimension_numbers<[1], [0], [0], [1], [0, 0, 1, 1], [], []>} : vector<16x16xf32>, vector<16x64xf32>, vector<16x64xf32> -> vector<16x64xf32>
    %cst_17 = arith.constant dense<0.000000e+00> : vector<16x64xf32>
    %16 = tpu.matmul %2, %12, %cst_17 {dimension_numbers = #tpu.dot_dimension_numbers<[1], [0], [0], [1], [0, 0, 1, 1], [], []>} : vector<16x16xf32>, vector<16x64xf32>, vector<16x64xf32> -> vector<16x64xf32>
    %17 = tpu.concatenate %15, %12, %16 in 1 : vector<16x64xf32>, vector<16x64xf32>, vector<16x64xf32> -> vector<16x192xf32>
    %cst_18 = arith.constant dense<0.000000e+00> : vector<16x64xf32>
    %18 = tpu.matmul %17, %13, %cst_18 {dimension_numbers = #tpu.dot_dimension_numbers<[1], [0], [0], [1], [0, 0, 1, 1], [], []>} : vector<16x192xf32>, vector<192x64xf32>, vector<16x64xf32> -> vector<16x64xf32>
    %19 = vector.broadcast %14 : vector<1x64xf32> to vector<16x64xf32>
    %20 = arith.addf %18, %19 : vector<16x64xf32>
    %cst_19 = arith.constant 0.000000e+00 : f32
    %21 = vector.broadcast %cst_19 : f32 to vector<16x64xf32>
    %22 = arith.maximumf %20, %21 : vector<16x64xf32>
    %c0_20 = arith.constant 0 : index
    %c0_21 = arith.constant 0 : index
    %23 = vector.load %arg8[%c0_20, %c0_21] : memref<64x32xf32, #tpu.memory_space<vmem>>, vector<64x32xf32>
    %c0_22 = arith.constant 0 : index
    %c0_23 = arith.constant 0 : index
    %24 = vector.load %arg9[%c0_22, %c0_23] : memref<1x32xf32, #tpu.memory_space<vmem>>, vector<1x32xf32>
    %c0_24 = arith.constant 0 : index
    %c0_25 = arith.constant 0 : index
    %25 = vector.load %arg10[%c0_24, %c0_25] : memref<32x64xf32, #tpu.memory_space<vmem>>, vector<32x64xf32>
    %c0_26 = arith.constant 0 : index
    %c0_27 = arith.constant 0 : index
    %26 = vector.load %arg11[%c0_26, %c0_27] : memref<1x64xf32, #tpu.memory_space<vmem>>, vector<1x64xf32>
    %cst_28 = arith.constant dense<0.000000e+00> : vector<16x32xf32>
    %27 = tpu.matmul %22, %23, %cst_28 {dimension_numbers = #tpu.dot_dimension_numbers<[1], [0], [0], [1], [0, 0, 1, 1], [], []>} : vector<16x64xf32>, vector<64x32xf32>, vector<16x32xf32> -> vector<16x32xf32>
    %28 = vector.broadcast %24 : vector<1x32xf32> to vector<16x32xf32>
    %29 = arith.addf %27, %28 : vector<16x32xf32>
    %cst_29 = arith.constant 0.000000e+00 : f32
    %30 = vector.broadcast %cst_29 : f32 to vector<16x32xf32>
    %31 = arith.maximumf %29, %30 : vector<16x32xf32>
    %cst_30 = arith.constant dense<0.000000e+00> : vector<16x64xf32>
    %32 = tpu.matmul %31, %25, %cst_30 {dimension_numbers = #tpu.dot_dimension_numbers<[1], [0], [0], [1], [0, 0, 1, 1], [], []>} : vector<16x32xf32>, vector<32x64xf32>, vector<16x64xf32> -> vector<16x64xf32>
    %33 = vector.broadcast %26 : vector<1x64xf32> to vector<16x64xf32>
    %34 = arith.addf %32, %33 : vector<16x64xf32>
    %cst_31 = arith.constant 0.000000e+00 : f32
    %35 = vector.broadcast %cst_31 : f32 to vector<16x64xf32>
    %36 = arith.maximumf %34, %35 : vector<16x64xf32>
    %37 = arith.addf %22, %36 : vector<16x64xf32>
    %c0_32 = arith.constant 0 : index
    %c0_33 = arith.constant 0 : index
    %38 = vector.load %arg12[%c0_32, %c0_33] : memref<16x64xf32, #tpu.memory_space<vmem>>, vector<16x64xf32>
    tpu.vector_store %arg12[%c0_32, %c0_33], %37 {strides = array<i32>} : memref<16x64xf32, #tpu.memory_space<vmem>>, vector<16x64xf32>,
    return
  }
  func.func @transform_0(%arg0: i32) -> (i32, i32) {
    %c0_i32 = arith.constant 0 : i32
    %c0_i32_0 = arith.constant 0 : i32
    %c0_i32_1 = arith.constant 0 : i32
    return %c0_i32, %c0_i32_0 : i32, i32
  }
  func.func @transform_1(%arg0: i32) -> (i32, i32) {
    %c0_i32 = arith.constant 0 : i32
    %c0_i32_0 = arith.constant 0 : i32
    %c0_i32_1 = arith.constant 0 : i32
    return %c0_i32, %c0_i32_0 : i32, i32
  }
  func.func @transform_2(%arg0: i32) -> (i32, i32) {
    %c0_i32 = arith.constant 0 : i32
    %c0_i32_0 = arith.constant 0 : i32
    %c0_i32_1 = arith.constant 0 : i32
    return %c0_i32, %c0_i32_0 : i32, i32
  }
  func.func @transform_3(%arg0: i32) -> (i32, i32) {
    %c0_i32 = arith.constant 0 : i32
    %c0_i32_0 = arith.constant 0 : i32
    %c0_i32_1 = arith.constant 0 : i32
    return %c0_i32, %c0_i32_0 : i32, i32
  }
  func.func @transform_4(%arg0: i32) -> (i32, i32) {
    %c0_i32 = arith.constant 0 : i32
    %c0_i32_0 = arith.constant 0 : i32
    %c0_i32_1 = arith.constant 0 : i32
    return %c0_i32, %c0_i32_0 : i32, i32
  }
  func.func @transform_5(%arg0: i32) -> (i32, i32) {
    %c0_i32 = arith.constant 0 : i32
    %c0_i32_0 = arith.constant 0 : i32
    %c0_i32_1 = arith.constant 0 : i32
    return %c0_i32, %c0_i32_0 : i32, i32
  }
  func.func @transform_6(%arg0: i32) -> (i32, i32) {
    %c0_i32 = arith.constant 0 : i32
    %c0_i32_0 = arith.constant 0 : i32
    %c0_i32_1 = arith.constant 0 : i32
    return %c0_i32, %c0_i32_0 : i32, i32
  }
  func.func @transform_7(%arg0: i32) -> (i32, i32) {
    %c0_i32 = arith.constant 0 : i32
    %c0_i32_0 = arith.constant 0 : i32
    %c0_i32_1 = arith.constant 0 : i32
    return %c0_i32, %c0_i32_0 : i32, i32
  }
  func.func @transform_8(%arg0: i32) -> (i32, i32) {
    %c0_i32 = arith.constant 0 : i32
    %c0_i32_0 = arith.constant 0 : i32
    %c0_i32_1 = arith.constant 0 : i32
    return %c0_i32, %c0_i32_0 : i32, i32
  }
  func.func @transform_9(%arg0: i32) -> (i32, i32) {
    %c0_i32 = arith.constant 0 : i32
    %c0_i32_0 = arith.constant 0 : i32
    %c0_i32_1 = arith.constant 0 : i32
    return %c0_i32, %c0_i32_0 : i32, i32
  }
  func.func @transform_10(%arg0: i32) -> (i32, i32) {
    %c0_i32 = arith.constant 0 : i32
    %c0_i32_0 = arith.constant 0 : i32
    %c0_i32_1 = arith.constant 0 : i32
    return %c0_i32, %c0_i32_0 : i32, i32
  }
  func.func @transform_11(%arg0: i32) -> (i32, i32) {
    %c0_i32 = arith.constant 0 : i32
    %c0_i32_0 = arith.constant 0 : i32
    %c0_i32_1 = arith.constant 0 : i32
    return %c0_i32, %c0_i32_0 : i32, i32
  }
}

</mosaic_0001>

<bundles_post_ra>
// kernel: conv_tdf_forward.1
= control target key start
LH: loop header
LB: loop body
LE: loop exit
PB: predicated region body
PF: predicated region fallthrough
CT: control target
= control target key end

     0   :  { %vm69_vm0 = vcmask 130048   ;;  %s1031_s25 = smov 64   ;;  %v1032_v10 = vmov 0.0|0.0   ;;  %vm240_vm1 = vcmask 523264   ;;  %vm715_vm2 = vcmask 261120   ;;  %s1369_s0 = inlined_call_operand.vmem [shape: f32[16,64], index: 0, kind: input, shape index: {}]   ;;  %s1370_s1 = inlined_call_operand.vmem [shape: f32[16,16], index: 1, kind: input, shape index: {}]   ;;  %s1371_s2 = inlined_call_operand.vmem [shape: f32[16,16], index: 2, kind: input, shape index: {}]   ;;  %s1372_s3 = inlined_call_operand.vmem [shape: f32[192,64], index: 3, kind: input, shape index: {}]   ;;  %s1373_s4 = inlined_call_operand.vmem [shape: f32[1,64], index: 4, kind: input, shape index: {}]   ;;  %s1374_s5 = inlined_call_operand.vmem [shape: f32[192,64], index: 5, kind: input, shape index: {}]   ;;  %s1375_s7 = inlined_call_operand.vmem [shape: f32[64,32], index: 7, kind: input, shape index: {}]   ;;  %s1376_s9 = inlined_call_operand.vmem [shape: f32[32,64], index: 9, kind: input, shape index: {}]   ;;  %s1377_s6 = inlined_call_operand.vmem [shape: f32[1,64], index: 6, kind: input, shape index: {}]   ;;  %s1378_s8 = inlined_call_operand.vmem [shape: f32[1,32], index: 8, kind: input, shape index: {}]   ;;  %s1379_s10 = inlined_call_operand.vmem [shape: f32[1,64], index: 10, kind: input, shape index: {}]   ;;  %s1380_s11 = inlined_call_operand.vmem [shape: f32[16,64], index: 11, kind: output, shape index: {}]  }
   0x1   :  { %v38_v0 = vld [vmem:[%s1369_s0] sm:$0xff]  ;;  %v39_v1 = vld [vmem:[%s1369_s0 + $0x8] sm:$0xff]  ;;  %v46_v11 = vld [vmem:[%s1372_s3 + $0x10] sm:$0xff] }
   0x2   :  { %v40_v2 = vld [vmem:[%s1370_s1] sm:$0xff]  ;;  %v917_v3 = vpack.c.bf16 %v39_v1, %v38_v0  ;;  %234 = vrot.lane.b32.xlu0 %v38_v0, %s1031_s25  ;;  %v45_v6 = vld [vmem:[%s1372_s3 + $0x8] sm:$0xff]  ;;  %v47_v12 = vld [vmem:[%s1372_s3 + $0x18] sm:$0xff] }
   0x3   :  { %863 = vmatprep.mubr.msk.f32.mxu0 %vm69_vm0, %v40_v2  ;;  %v1106_v4 = vld [vmem:[%s1371_s2] sm:$0xff]  ;;  %v1120_v7 = vld [vmem:[%s1370_s1 + $0x8] sm:$0xff]  ;;  %v929_v13 = vpack.c.bf16 %v47_v12, %v46_v11  ;;  %v50_v17 = vld [vmem:[%s1372_s3 + $0x30] sm:$0xff] }
   0x4   :  { %870 = vmatprep.mubr.msk.f32.mxu1 %vm69_vm0, %v1106_v4  ;;  %v44_v5 = vld [vmem:[%s1372_s3] sm:$0xff]  ;;  %918 = vmatprep.subr.bf16.mxu0 %v917_v3  ;;  %v1125_v8 = vld [vmem:[%s1371_s2 + $0x8] sm:$0xff]  ;;  %v51_v18 = vld [vmem:[%s1372_s3 + $0x38] sm:$0xff] }
   0x5   :  { %922 = vmatprep.subr.bf16.mxu1 %v917_v3  ;;  %920 = vmatpush3.bf16.msra.mxu0 %v917_v3  ;;  %v926_v9 = vpack.c.bf16 %v45_v6, %v44_v5  ;;  %v48_v14 = vld [vmem:[%s1372_s3 + $0x20] sm:$0xff]  ;;  %v49_v15 = vld [vmem:[%s1372_s3 + $0x28] sm:$0xff]  ;;  %v935_v19 = vpack.c.bf16 %v51_v18, %v50_v17  ;;  %v54_v23 = vld [vmem:[%s1372_s3 + $0x50] sm:$0xff] }
   0x6   :  { %924 = vmatpush3.bf16.msra.mxu1 %v917_v3  ;;  %236 = vrot.lane.b32.xlu0 %v39_v1, %s1031_s25  ;;  %v932_v16 = vpack.c.bf16 %v49_v15, %v48_v14  ;;  %v52_v20 = vld [vmem:[%s1372_s3 + $0x40] sm:$0xff]  ;;  %v53_v21 = vld [vmem:[%s1372_s3 + $0x48] sm:$0xff]  ;;  %v55_v24 = vld [vmem:[%s1372_s3 + $0x58] sm:$0xff] }
   0x7   :  { %925 = vmatprep.subr.bf16.mxu0 %v1032_v10  ;;  %v938_v22 = vpack.c.bf16 %v53_v21, %v52_v20  ;;  %v941_v25 = vpack.c.bf16 %v55_v24, %v54_v23  ;;  %v56_v26 = vld [vmem:[%s1372_s3 + $0x60] sm:$0xff]  ;;  %v57_v27 = vld [vmem:[%s1372_s3 + $0x68] sm:$0xff]  ;;  %v58_v29 = vld [vmem:[%s1372_s3 + $0x70] sm:$0xff] }
   0x8   :  { %864 = vmatmul.mubr.msk.f32.vlgmr.msra.gmra.mrb[0].mxu0 %vm69_vm0, %v1120_v7  ;;  %v944_v28 = vpack.c.bf16 %v57_v27, %v56_v26  ;;  %v59_v30 = vld [vmem:[%s1372_s3 + $0x78] sm:$0xff]  ;;  %v60_v32 = vld [vmem:[%s1372_s3 + $0x80] sm:$0xff]  ;;  %v61_v33 = vld [vmem:[%s1372_s3 + $0x88] sm:$0xff] }
   0x9   :  { %871 = vmatmul.mubr.msk.f32.vlgmr.msra.gmra.mrb[0].mxu1 %vm69_vm0, %v1125_v8  ;;  %927 = vmatpush1.bf16.msra.mxu0 %v926_v9  ;;  %v947_v31 = vpack.c.bf16 %v59_v30, %v58_v29  ;;  %v950_v34 = vpack.c.bf16 %v61_v33, %v60_v32  ;;  %v62_v35 = vld [vmem:[%s1372_s3 + $0x90] sm:$0xff]  ;;  %v63_v36 = vld [vmem:[%s1372_s3 + $0x98] sm:$0xff]  ;;  %v64_v38 = vld [vmem:[%s1372_s3 + $0xa0] sm:$0xff] }
   0xa   :  { %877 = vmatprep.mubr.msk.f32.mxu1 %vm69_vm0, %v40_v2  ;;  %928 = vmatprep.subr.bf16.mxu0 %v1032_v10  ;;  %v953_v37 = vpack.c.bf16 %v63_v36, %v62_v35  ;;  %v65_v39 = vld [vmem:[%s1372_s3 + $0xa8] sm:$0xff]  ;;  %v66_v41 = vld [vmem:[%s1372_s3 + $0xb0] sm:$0xff]  ;;  %v67_v42 = vld [vmem:[%s1372_s3 + $0xb8] sm:$0xff] }
   0xb   :  { %v956_v40 = vpack.c.bf16 %v65_v39, %v64_v38  ;;  %v959_v43 = vpack.c.bf16 %v67_v42, %v66_v41  ;;  %v811_v52 = vld [vmem:[%s1373_s4] ss:$0 sm:$0xff]  ;;  %v333_v63 = vld [vmem:[%s1374_s5 + $0x8] sm:$0xff]  ;;  %v334_v1 = vld [vmem:[%s1374_s5 + $0x10] sm:$0xff] }
   0xc   :  { %v332_v62 = vld [vmem:[%s1374_s5] sm:$0xff]  ;;  %v335_v2 = vld [vmem:[%s1374_s5 + $0x18] sm:$0xff]  ;;  %v337_v5 = vld [vmem:[%s1374_s5 + $0x28] sm:$0xff] }
   0xd   :  { %930 = vmatpush1.bf16.msra.mxu0 %v929_v13  ;;  %v970_v0 = vpack.c.bf16 %v333_v63, %v332_v62  ;;  %v973_v3 = vpack.c.bf16 %v335_v2, %v334_v1  ;;  %v340_v11 = vld [vmem:[%s1374_s5 + $0x40] sm:$0xff]  ;;  %v341_v12 = vld [vmem:[%s1374_s5 + $0x48] sm:$0xff]  ;;  %v342_v14 = vld [vmem:[%s1374_s5 + $0x50] sm:$0xff] }
   0xe   :  { %931 = vmatprep.subr.bf16.mxu0 %v1032_v10  ;;  %v982_v13 = vpack.c.bf16 %v341_v12, %v340_v11  ;;  %v343_v15 = vld [vmem:[%s1374_s5 + $0x58] sm:$0xff]  ;;  %v344_v17 = vld [vmem:[%s1374_s5 + $0x60] sm:$0xff]  ;;  %v345_v18 = vld [vmem:[%s1374_s5 + $0x68] sm:$0xff] }
   0xf   :  { %v346_v20 = vld [vmem:[%s1374_s5 + $0x70] sm:$0xff]  ;;  %v347_v21 = vld [vmem:[%s1374_s5 + $0x78] sm:$0xff]  ;;  %v348_v23 = vld [vmem:[%s1374_s5 + $0x80] sm:$0xff] }
  0x10   :  { %v349_v24 = vld [vmem:[%s1374_s5 + $0x88] sm:$0xff]  ;;  %v350_v26 = vld [vmem:[%s1374_s5 + $0x90] sm:$0xff]  ;;  %v351_v27 = vld [vmem:[%s1374_s5 + $0x98] sm:$0xff] }
  0x11   :  { %933 = vmatpush1.bf16.msra.mxu0 %v932_v16  ;;  %v985_v16 = vpack.c.bf16 %v343_v15, %v342_v14  ;;  %v352_v29 = vld [vmem:[%s1374_s5 + $0xa0] sm:$0xff]  ;;  %v353_v30 = vld [vmem:[%s1374_s5 + $0xa8] sm:$0xff]  ;;  %v354_v32 = vld [vmem:[%s1374_s5 + $0xb0] sm:$0xff] }
  0x12   :  { %934 = vmatprep.subr.bf16.mxu0 %v1032_v10  ;;  %v355_v33 = vld [vmem:[%s1374_s5 + $0xb8] sm:$0xff]  ;;  %v606_v35 = vld [vmem:[%s1375_s7] sm:$0xff]  ;;  %v607_v36 = vld [vmem:[%s1375_s7 + $0x8] sm:$0xff] }
  0x13   :  { %v609_v38 = vld [vmem:[%s1375_s7 + $0x18] sm:$0xff]  ;;  %v617_v2 = vld [vmem:[%s1376_s9 + $0x10] sm:$0xff] }
  0x15   :  { %936 = vmatpush1.bf16.msra.mxu0 %v935_v19  ;;  %v988_v19 = vpack.c.bf16 %v345_v18, %v344_v17 }
  0x16   :  { %937 = vmatprep.subr.bf16.mxu0 %v1032_v10 }
  0x19   :  { %939 = vmatpush1.bf16.msra.mxu0 %v938_v22  ;;  %v991_v22 = vpack.c.bf16 %v347_v21, %v346_v20 }
  0x1a   :  { %940 = vmatprep.subr.bf16.mxu0 %v1032_v10 }
  0x1d   :  { %942 = vmatpush1.bf16.msra.mxu0 %v941_v25  ;;  %v994_v25 = vpack.c.bf16 %v349_v24, %v348_v23 }
  0x1e   :  { %943 = vmatprep.subr.bf16.mxu0 %v1032_v10 }
  0x21   :  { %945 = vmatpush1.bf16.msra.mxu0 %v944_v28  ;;  %v997_v28 = vpack.c.bf16 %v351_v27, %v350_v26 }
  0x22   :  { %946 = vmatprep.subr.bf16.mxu0 %v1032_v10 }
  0x25   :  { %948 = vmatpush1.bf16.msra.mxu0 %v947_v31  ;;  %v1000_v31 = vpack.c.bf16 %v353_v30, %v352_v29 }
  0x26   :  { %949 = vmatprep.subr.bf16.mxu0 %v1032_v10 }
  0x29   :  { %951 = vmatpush1.bf16.msra.mxu0 %v950_v34  ;;  %v1003_v34 = vpack.c.bf16 %v355_v33, %v354_v32 }
  0x2a   :  { %952 = vmatprep.subr.bf16.mxu0 %v1032_v10 }
  0x2d   :  { %954 = vmatpush1.bf16.msra.mxu0 %v953_v37  ;;  %v1005_v37 = vpack.c.bf16 %v607_v36, %v606_v35 }
  0x2e   :  { %955 = vmatprep.subr.bf16.mxu0 %v1032_v10 }
  0x31   :  { %957 = vmatpush1.bf16.msra.mxu0 %v956_v40 }
  0x32   :  { %958 = vmatprep.subr.bf16.mxu0 %v1032_v10 }
  0x35   :  { %960 = vmatpush1.bf16.msra.mxu0 %v959_v43 }
  0x36   :  { %1006 = vmatprep.subr.bf16.mxu0 %v1005_v37 }
  0x74   :  { %v235_v44 = vpop.permute.xlu0 %234 }
  0x78   :  { %v237_v50 = vpop.permute.xlu0 %236 }
  0xdb   :  { %v865_v45 = vpop.f32.mrb[0].mxu0 }
  0xdc   :  { %v872_v46 = vpop.f32.mrb[0].mxu1  ;;  %v142_v47 = vpop.f32.mrb[1].mxu0  ;;  %v242_v51 = vsel %vm240_vm1, %v865_v45, %v237_v50 }
  0xdd   :  { %v223_v48 = vpop.f32.mrb[1].mxu1  ;;  %v241_v49 = vsel %vm240_vm1, %v142_v47, %v235_v44 }
  0xde   :  { %812 = vmatprep.mubr.msk.f32.mxu0 %vm240_vm1, %v223_v48  ;;  %v610_v48 = vld [vmem:[%s1375_s7 + $0x20] sm:$0xff] }
  0xdf   :  { %320 = vmatmul.mubr.f32.vlgmr.msra.gmra.mrb[2].mxu0 %v241_v49  ;;  %v611_v49 = vld [vmem:[%s1375_s7 + $0x28] sm:$0xff] }
  0xe0   :  { %813 = vmatprep.mubr.msk.f32.mxu0 %vm240_vm1, %v872_v46  ;;  %1008 = vmatpush3.bf16.msra.mxu0 %v1005_v37  ;;  %v1013_v50 = vpack.c.bf16 %v611_v49, %v610_v48 }
  0xe3   :  { %325 = vmatmul.mubr.f32.gmra.mrb[4].mxu0 %v242_v51  ;;  %v612_v51 = vld [vmem:[%s1375_s7 + $0x30] sm:$0xff] }
 0x1b2   :  { %v321_v53 = vpop.f32.mrb[2].mxu0 }
 0x1b3   :  { %v322_v54 = vadd.f32 %v811_v52, %v321_v53  ;;  %v323_v55 = vpop.f32.mrb[3].mxu0 }
 0x1b4   :  { %v616_v55 = vld [vmem:[%s1376_s9 + $0x8] sm:$0xff] }
 0x1b5   :  { %v330_v56 = vmax.f32 %v322_v54, 0.0  ;;  %v615_v54 = vld [vmem:[%s1376_s9] sm:$0xff] }
 0x1b6   :  { %v326_v57 = vpop.f32.mrb[4].mxu0 }
 0x1b7   :  { %v327_v58 = vadd.f32 %v811_v52, %v326_v57  ;;  %v328_v59 = vpop.f32.mrb[5].mxu0  ;;  %509 = vrot.lane.b32.xlu1 %v330_v56, %s1031_s25  ;;  %v613_v52 = vld [vmem:[%s1375_s7 + $0x38] sm:$0xff]  ;;  %v818_v57 = vld [vmem:[%s1377_s6] ss:$0 sm:$0xff] }
 0x1b8   :  { %v1017_v53 = vpack.c.bf16 %v613_v52, %v612_v51 }
 0x1b9   :  { %v331_v60 = vmax.f32 %v327_v58, 0.0 }
 0x1bb   :  { %v961_v61 = vpack.c.bf16 %v331_v60, %v330_v56  ;;  %511 = vrot.lane.b32.xlu1 %v331_v60, %s1031_s25  ;;  %v1021_v56 = vpack.c.bf16 %v616_v55, %v615_v54 }
 0x1bd   :  { %962 = vmatprep.subr.bf16.mxu1 %v961_v61 }
 0x1be   :  { %964 = vmatpush3.bf16.msra.mxu1 %v961_v61 }
 0x1bf   :  { %966 = vmatprep.subr.bf16.mxu1 %v961_v61 }
 0x1c1   :  { %878 = vmatmul.mubr.msk.f32.vlgmr.msra.gmra.mrb[2].mxu1 %vm69_vm0, %v1120_v7  ;;  %v338_v7 = vld [vmem:[%s1374_s5 + $0x30] sm:$0xff] }
 0x1c2   :  { %968 = vmatpush3.bf16.msra.mxu1 %v961_v61  ;;  %884 = vmatprep.mubr.msk.f32.mxu1 %vm69_vm0, %v1106_v4  ;;  %v336_v4 = vld [vmem:[%s1374_s5 + $0x20] sm:$0xff] }
 0x1c3   :  { %969 = vmatprep.subr.bf16.mxu1 %v1032_v10  ;;  %v976_v6 = vpack.c.bf16 %v337_v5, %v336_v4  ;;  %v821_v5 = vld [vmem:[%s1378_s8] ss:$0 sm:$0xff] }
 0x1c5   :  { %885 = vmatmul.mubr.msk.f32.vlgmr.msra.gmra.mrb[4].mxu1 %vm69_vm0, %v1125_v8  ;;  %v339_v8 = vld [vmem:[%s1374_s5 + $0x38] sm:$0xff] }
 0x1c6   :  { %971 = vmatpush1.bf16.msra.mxu1 %v970_v0  ;;  %v979_v9 = vpack.c.bf16 %v339_v8, %v338_v7 }
 0x1c7   :  { %972 = vmatprep.subr.bf16.mxu1 %v1032_v10 }
 0x1ca   :  { %974 = vmatpush1.bf16.msra.mxu1 %v973_v3  ;;  %v618_v3 = vld [vmem:[%s1376_s9 + $0x18] sm:$0xff] }
 0x1cb   :  { %975 = vmatprep.subr.bf16.mxu1 %v1032_v10  ;;  %v1025_v4 = vpack.c.bf16 %v618_v3, %v617_v2 }
 0x1ce   :  { %977 = vmatpush1.bf16.msra.mxu1 %v976_v6 }
 0x1cf   :  { %978 = vmatprep.subr.bf16.mxu1 %v1032_v10 }
 0x1d2   :  { %980 = vmatpush1.bf16.msra.mxu1 %v979_v9 }
 0x1d3   :  { %981 = vmatprep.subr.bf16.mxu1 %v1032_v10 }
 0x1d6   :  { %983 = vmatpush1.bf16.msra.mxu1 %v982_v13  ;;  %v824_v13 = vld [vmem:[%s1379_s10] ss:$0 sm:$0xff] }
 0x1d7   :  { %984 = vmatprep.subr.bf16.mxu1 %v1032_v10 }
 0x1da   :  { %986 = vmatpush1.bf16.msra.mxu1 %v985_v16 }
 0x1db   :  { %987 = vmatprep.subr.bf16.mxu1 %v1032_v10 }
 0x1de   :  { %989 = vmatpush1.bf16.msra.mxu1 %v988_v19 }
 0x1df   :  { %990 = vmatprep.subr.bf16.mxu1 %v1032_v10 }
 0x1e2   :  { %992 = vmatpush1.bf16.msra.mxu1 %v991_v22 }
 0x1e3   :  { %993 = vmatprep.subr.bf16.mxu1 %v1032_v10 }
 0x1e6   :  { %995 = vmatpush1.bf16.msra.mxu1 %v994_v25 }
 0x1e7   :  { %996 = vmatprep.subr.bf16.mxu1 %v1032_v10 }
 0x1ea   :  { %998 = vmatpush1.bf16.msra.mxu1 %v997_v28 }
 0x1eb   :  { %999 = vmatprep.subr.bf16.mxu1 %v1032_v10 }
 0x1ee   :  { %1001 = vmatpush1.bf16.msra.mxu1 %v1000_v31 }
 0x1ef   :  { %1002 = vmatprep.subr.bf16.mxu1 %v1032_v10  ;;  %v608_v10 = vld [vmem:[%s1375_s7 + $0x10] sm:$0xff] }
 0x1f0   :  { %v1009_v39 = vpack.c.bf16 %v609_v38, %v608_v10 }
 0x1f2   :  { %1004 = vmatpush1.bf16.msra.mxu1 %v1003_v34  ;;  %1010 = vmatprep.subr.bf16.mxu0 %v1009_v39 }
 0x1f3   :  { %1012 = vmatpush3.bf16.msra.mxu0 %v1009_v39  ;;  %1022 = vmatprep.subr.bf16.mxu1 %v1021_v56 }
 0x1f4   :  { %1014 = vmatprep.subr.bf16.mxu0 %v1013_v50 }
 0x1f7   :  { %1016 = vmatpush3.bf16.msra.mxu0 %v1013_v50 }
 0x1f8   :  { %1018 = vmatprep.subr.bf16.mxu0 %v1017_v53 }
 0x1fb   :  { %1020 = vmatpush3.bf16.msra.mxu0 %v1017_v53 }
 0x229   :  { %v510_v42 = vpop.permute.xlu1 %509 }
 0x22d   :  { %v512_v46 = vpop.permute.xlu1 %511 }
 0x294   :  { %v879_v40 = vpop.f32.mrb[2].mxu1 }
 0x295   :  { %v423_v41 = vpop.f32.mrb[3].mxu1  ;;  %v516_v47 = vsel %vm240_vm1, %v879_v40, %v512_v46 }
 0x296   :  { %v515_v45 = vsel %vm240_vm1, %v423_v41, %v510_v42 }
 0x298   :  { %v886_v43 = vpop.f32.mrb[4].mxu1 }
 0x299   :  { %v498_v44 = vpop.f32.mrb[5].mxu1 }
 0x29a   :  { %819 = vmatprep.mubr.msk.f32.mxu1 %vm240_vm1, %v498_v44 }
 0x29b   :  { %594 = vmatmul.mubr.f32.vlgmr.msra.gmra.mrb[6].mxu1 %v515_v45 }
 0x29c   :  { %820 = vmatprep.mubr.msk.f32.mxu1 %vm240_vm1, %v886_v43  ;;  %1024 = vmatpush3.bf16.msra.mxu1 %v1021_v56 }
 0x29d   :  { %1026 = vmatprep.subr.bf16.mxu1 %v1025_v4 }
 0x29f   :  { %599 = vmatmul.mubr.f32.gmra.mrb[8].mxu1 %v516_v47 }
 0x2a0   :  { %1028 = vmatpush3.bf16.msra.mxu1 %v1025_v4 }
 0x36e   :  { %v595_v58 = vpop.f32.mrb[6].mxu1 }
 0x36f   :  { %v596_v59 = vadd.f32 %v818_v57, %v595_v58  ;;  %v597_v60 = vpop.f32.mrb[7].mxu1 }
 0x371   :  { %v604_v61 = vmax.f32 %v596_v59, 0.0 }
 0x372   :  { %v600_v62 = vpop.f32.mrb[8].mxu1 }
 0x373   :  { %v601_v63 = vadd.f32 %v818_v57, %v600_v62  ;;  %v602_v0 = vpop.f32.mrb[9].mxu1  ;;  %903 = vmatprep.mubr.msk.f32.mxu0 %vm240_vm1, %v604_v61 }
 0x375   :  { %v605_v1 = vmax.f32 %v601_v63, 0.0 }
 0x377   :  { %904 = vmatmul.mubr.msk.f32.vlgmr.msra.gmra.mrb[6].mxu0 %vm240_vm1, %v605_v1 }
 0x44a   :  { %v905_v6 = vpop.f32.mrb[6].mxu0 }
 0x44b   :  { %v704_v7 = vadd.f32 %v905_v6, %v821_v5  ;;  %v698_v8 = vpop.f32.mrb[7].mxu0 }
 0x44c   :  { %v699_v9 = vadd.f32 %v821_v5, %v698_v8 }
 0x44d   :  { %v708_v12 = vmax.f32 %v704_v7, 0.0 }
 0x44e   :  { %v707_v11 = vmax.f32 %v699_v9, 0.0 }
 0x450   :  { %914 = vmatprep.mubr.msk.f32.mxu1 %vm715_vm2, %v707_v11 }
 0x451   :  { %915 = vmatmul.mubr.msk.f32.vlgmr.msra.gmra.mrb[10].mxu1 %vm715_vm2, %v708_v12 }
 0x524   :  { %v916_v14 = vpop.f32.mrb[10].mxu1 }
 0x525   :  { %v794_v15 = vadd.f32 %v916_v14, %v824_v13  ;;  %v788_v16 = vpop.f32.mrb[11].mxu1 }
 0x526   :  { %v789_v17 = vadd.f32 %v824_v13, %v788_v16 }
 0x527   :  { %v798_v18 = vmax.f32 %v794_v15, 0.0 }
 0x528   :  { %v797_v19 = vmax.f32 %v789_v17, 0.0 }
 0x529   :  { %v800_v20 = vadd.f32 %v798_v18, %v605_v1 }
 0x52a   :  { %v799_v21 = vadd.f32 %v797_v19, %v604_v61 }
 0x52b   :  { %802 = vst.msk [vmem:[%s1380_s11 + $0x8] sm:$0xff] %vm240_vm1, %v800_v20 }
 0x52c   :  { %801 = vst.msk [vmem:[%s1380_s11] sm:$0xff] %vm240_vm1, %v799_v21 }

</bundles_post_ra>
